<compile_context>
chip_gen: v7x
topology: tpu7x:2x2x1
jax: 0.10.0
libtpu: 0.0.40
codegen_flags: <defaults>
</compile_context>

<pallas_src>
import functools

import jax
import jax.numpy as jnp
from jax.experimental import pallas as pl
from jax.experimental.pallas import tpu as pltpu


def _label_smooth_ce_kernel(x_ref, t_ref, o_ref, *, epsilon, num_classes,
                            n_rows, tile_n):
    # x_ref : (TN, C) logits in native dtype
    # t_ref : (TN, 1) int32 labels
    # o_ref : (1, 1)  f32 scalar loss; used as the running accumulator across the grid
    i = pl.program_id(0)

    @pl.when(i == 0)
    def _():
        o_ref[...] = jnp.zeros_like(o_ref)

    x = x_ref[...].astype(jnp.float32)                       # (TN, C) upcast in VMEM
    tn, c = x.shape

    # numerically-stable log-softmax pieces (per row)
    m = jnp.max(x, axis=1, keepdims=True)                    # (TN, 1)
    lse = jnp.log(jnp.sum(jnp.exp(x - m), axis=1, keepdims=True))   # (TN, 1)

    # x[row, target[row]] without materializing a one-hot
    class_ids = jax.lax.broadcasted_iota(jnp.int32, (tn, c), 1)
    tgt = t_ref[...]                                          # (TN, 1) int32
    x_at_t = jnp.sum(jnp.where(class_ids == tgt, x, 0.0), axis=1, keepdims=True)
    row_sum_x = jnp.sum(x, axis=1, keepdims=True)             # (TN, 1)

    # per-row smoothed CE:
    #   -(1-eps)*log_prob[t] - (eps/C)*sum_c log_prob_c
    # = (m + lse) - (1-eps)*x[t] - (eps/C)*sum_c x
    eps = jnp.float32(epsilon)
    loss_row = (m + lse) - (1.0 - eps) * x_at_t - (eps / num_classes) * row_sum_x

    # mask rows past the true batch size (ragged last tile)
    row_ids = i * tile_n + jax.lax.broadcasted_iota(jnp.int32, (tn, 1), 0)
    loss_row = jnp.where(row_ids < n_rows, loss_row, 0.0)

    o_ref[...] += jnp.sum(loss_row, keepdims=True)            # (1, 1)

    @pl.when(i == pl.num_programs(0) - 1)
    def _():
        o_ref[...] = o_ref[...] / jnp.float32(n_rows)


def _choose_tile_n(n, c, itemsize, target_bytes=4 * 1024 * 1024, max_rows=1024):
    """Pick a batch-tile size: big enough to amortize per-step overhead (~0.35us),
    small enough that double-buffered input tiles stay well under scoped VMEM."""
    rows_by_vmem = max(8, target_bytes // max(1, c * itemsize))
    tn = min(n, max_rows, rows_by_vmem)
    if tn >= n:
        return n                      # full batch in one block (block == array dim)
    return max(8, (tn // 8) * 8)      # keep sublane dim a multiple of 8 when tiling


def cross_entropy_label_smooth(inputs, targets, *, num_classes, epsilon=0.1,
                               tile_n=None):
    """inputs: (N, C) float logits (any float dtype); targets: (N,) int labels.
    Returns a scalar f32 loss."""
    n, c = inputs.shape
    assert c == num_classes
    targets_2d = targets.astype(jnp.int32).reshape(n, 1)

    itemsize = jnp.dtype(inputs.dtype).itemsize
    if tile_n is None:
        tile_n = _choose_tile_n(n, c, itemsize)
    grid_n = pl.cdiv(n, tile_n)

    kernel = functools.partial(
        _label_smooth_ce_kernel,
        epsilon=float(epsilon),
        num_classes=int(num_classes),
        n_rows=int(n),
        tile_n=int(tile_n),
    )

    out = pl.pallas_call(
        kernel,
        out_shape=jax.ShapeDtypeStruct((1, 1), jnp.float32),
        grid_spec=pltpu.PrefetchScalarGridSpec(
            num_scalar_prefetch=0,
            grid=(grid_n,),
            in_specs=[
                pl.BlockSpec((tile_n, c), lambda i: (i, 0)),   # logits, native dtype
                pl.BlockSpec((tile_n, 1), lambda i: (i, 0)),   # labels
            ],
            out_specs=pl.BlockSpec((1, 1), lambda i: (0, 0)),  # resident accumulator
        ),
        compiler_params=pltpu.CompilerParams(
            dimension_semantics=("arbitrary",),   # sequential: running-sum accumulator
            vmem_limit_bytes=32 * 1024 * 1024,
        ),
    )(inputs, targets_2d)   # <- no upcast here: DMA logits in native dtype
    return out[0, 0]


def _reference(inputs, targets, num_classes, epsilon=0.1):
    log_probs = jax.nn.log_softmax(inputs.astype(jnp.float32), axis=1)
    onehot = jax.nn.one_hot(targets, num_classes, dtype=jnp.float32)
    smoothed = (1.0 - epsilon) * onehot + epsilon / num_classes
    return jnp.sum(jnp.mean(-smoothed * log_probs, axis=0))


if __name__ == "__main__":
    num_classes = 16
    batch = 8
    epsilon = 0.1

    key = jax.random.PRNGKey(0)
    k1, k2 = jax.random.split(key)
    # bf16 logits to exercise the native-dtype (half-bandwidth) DMA path.
    logits = jax.random.normal(k1, (batch, num_classes), dtype=jnp.float32).astype(
        jnp.bfloat16)
    labels = jax.random.randint(k2, (batch,), 0, num_classes, dtype=jnp.int32)

    loss = cross_entropy_label_smooth(
        logits, labels, num_classes=num_classes, epsilon=epsilon
    )
    loss = jax.block_until_ready(loss)

    ref = _reference(logits, labels, num_classes, epsilon)
    assert jnp.allclose(loss, ref, atol=1e-4, rtol=1e-4), (loss, ref)

    print("KERNEL_OK")
</pallas_src>

<mosaic_0001>
module attributes {stable_mosaic.version = 11 : i64} {
  func.func @_label_smooth_ce_kernel(%arg0: i32, %arg1: memref<8x16xbf16, #tpu.memory_space<vmem>>, %arg2: memref<8x1xi32, #tpu.memory_space<vmem>>, %arg3: memref<1x1xf32, #tpu.memory_space<vmem>>) attributes {dimension_semantics = [#tpu.dimension_semantics<arbitrary>], iteration_bounds = array<i64: 1>, scalar_prefetch = 0 : i64, scratch_operands = 0 : i64, tpu.core_type = #tpu.core_type<tc>, window_params = [{transform_indices = @transform_0, window_bounds = array<i64: 8, 16>}, {transform_indices = @transform_1, window_bounds = array<i64: 8, 1>}, {pipeline_mode = #tpu.pipeline_mode<synchronous>, transform_indices = @transform_2, window_bounds = array<i64: 1, 1>}]} {
    %c0_i32 = arith.constant 0 : i32
    %0 = arith.cmpi eq, %arg0, %c0_i32 : i32
    %1 = arith.extui %0 : i1 to i32
    %c0_i32_0 = arith.constant 0 : i32
    %2 = arith.cmpi ne, %1, %c0_i32_0 : i32
    scf.if %2 {
      %cst_21 = arith.constant 0.000000e+00 : f32
      %51 = vector.broadcast %cst_21 : f32 to vector<1x1xf32>
      %c0_22 = arith.constant 0 : index
      %c0_23 = arith.constant 0 : index
      %52 = vector.load %arg3[%c0_22, %c0_23] : memref<1x1xf32, #tpu.memory_space<vmem>>, vector<1x1xf32>
      tpu.vector_store %arg3[%c0_22, %c0_23], %51 {strides = array<i32>} : memref<1x1xf32, #tpu.memory_space<vmem>>, vector<1x1xf32>,
    } else {
    }
    %c0 = arith.constant 0 : index
    %c0_1 = arith.constant 0 : index
    %3 = vector.load %arg1[%c0, %c0_1] : memref<8x16xbf16, #tpu.memory_space<vmem>>, vector<8x16xbf16>
    %4 = arith.extf %3 : vector<8x16xbf16> to vector<8x16xf32>
    %cst = arith.constant dense<0xFF800000> : vector<8xf32>
    %5 = vector.multi_reduction <maximumf>, %4, %cst [1] : vector<8x16xf32> to vector<8xf32>
    %6 = vector.shape_cast %5 : vector<8xf32> to vector<8x1xf32>
    %7 = vector.broadcast %6 : vector<8x1xf32> to vector<8x16xf32>
    %8 = arith.subf %4, %7 : vector<8x16xf32>
    %9 = math.exp %8 : vector<8x16xf32>
    %cst_2 = arith.constant dense<0.000000e+00> : vector<8xf32>
    %10 = vector.multi_reduction <add>, %9, %cst_2 [1] : vector<8x16xf32> to vector<8xf32>
    %11 = vector.shape_cast %10 : vector<8xf32> to vector<8x1xf32>
    %12 = math.log %11 : vector<8x1xf32>
    %13 = tpu.iota {dimensions = array<i32: 1>} : vector<8x16xi32>
    %c0_3 = arith.constant 0 : index
    %c0_4 = arith.constant 0 : index
    %14 = vector.load %arg2[%c0_3, %c0_4] : memref<8x1xi32, #tpu.memory_space<vmem>>, vector<8x1xi32>
    %15 = vector.broadcast %14 : vector<8x1xi32> to vector<8x16xi32>
    %16 = arith.cmpi eq, %13, %15 : vector<8x16xi32>
    %cst_5 = arith.constant 0.000000e+00 : f32
    %17 = vector.broadcast %cst_5 : f32 to vector<8x16xf32>
    %18 = arith.select %16, %4, %17 : vector<8x16xi1>, vector<8x16xf32>
    %cst_6 = arith.constant dense<0.000000e+00> : vector<8xf32>
    %19 = vector.multi_reduction <add>, %18, %cst_6 [1] : vector<8x16xf32> to vector<8xf32>
    %20 = vector.shape_cast %19 : vector<8xf32> to vector<8x1xf32>
    %cst_7 = arith.constant dense<0.000000e+00> : vector<8xf32>
    %21 = vector.multi_reduction <add>, %4, %cst_7 [1] : vector<8x16xf32> to vector<8xf32>
    %22 = vector.shape_cast %21 : vector<8xf32> to vector<8x1xf32>
    %23 = arith.addf %6, %12 : vector<8x1xf32>
    %cst_8 = arith.constant 1.000000e+00 : f32
    %cst_9 = arith.constant 1.000000e-01 : f32
    %24 = arith.subf %cst_8, %cst_9 : f32
    %25 = vector.broadcast %24 : f32 to vector<8x1xf32>
    %26 = arith.mulf %25, %20 : vector<8x1xf32>
    %27 = arith.subf %23, %26 : vector<8x1xf32>
    %cst_10 = arith.constant 1.000000e-01 : f32
    %cst_11 = arith.constant 1.600000e+01 : f32
    %28 = arith.divf %cst_10, %cst_11 : f32
    %29 = vector.broadcast %28 : f32 to vector<8x1xf32>
    %30 = arith.mulf %29, %22 : vector<8x1xf32>
    %31 = arith.subf %27, %30 : vector<8x1xf32>
    %c8_i32 = arith.constant 8 : i32
    %32 = arith.muli %arg0, %c8_i32 : i32
    %33 = tpu.iota {dimensions = array<i32: 0>} : vector<8x1xi32>
    %34 = vector.broadcast %32 : i32 to vector<8x1xi32>
    %35 = arith.addi %34, %33 : vector<8x1xi32>
    %c8_i32_12 = arith.constant 8 : i32
    %36 = vector.broadcast %c8_i32_12 : i32 to vector<8x1xi32>
    %37 = arith.cmpi slt, %35, %36 : vector<8x1xi32>
    %cst_13 = arith.constant 0.000000e+00 : f32
    %38 = vector.broadcast %cst_13 : f32 to vector<8x1xf32>
    %39 = arith.select %37, %31, %38 : vector<8x1xi1>, vector<8x1xf32>
    %c0_14 = arith.constant 0 : index
    %c0_15 = arith.constant 0 : index
    %40 = vector.load %arg3[%c0_14, %c0_15] : memref<1x1xf32, #tpu.memory_space<vmem>>, vector<1x1xf32>
    %41 = vector.shape_cast %39 : vector<8x1xf32> to vector<1x8x1xf32>
    %cst_16 = arith.constant dense<0.000000e+00> : vector<1xf32>
    %42 = vector.multi_reduction <add>, %41, %cst_16 [1, 2] : vector<1x8x1xf32> to vector<1xf32>
    %43 = vector.shape_cast %42 : vector<1xf32> to vector<1x1x1xf32>
    %44 = vector.extract %43[0, 0, 0] : f32 from vector<1x1x1xf32>
    %45 = vector.broadcast %44 : f32 to vector<1x1xf32>
    %46 = arith.addf %40, %45 : vector<1x1xf32>
    %c0_17 = arith.constant 0 : index
    %c0_18 = arith.constant 0 : index
    %47 = vector.load %arg3[%c0_17, %c0_18] : memref<1x1xf32, #tpu.memory_space<vmem>>, vector<1x1xf32>
    tpu.vector_store %arg3[%c0_17, %c0_18], %46 {strides = array<i32>} : memref<1x1xf32, #tpu.memory_space<vmem>>, vector<1x1xf32>,
    %c0_i32_19 = arith.constant 0 : i32
    %48 = arith.cmpi eq, %arg0, %c0_i32_19 : i32
    %49 = arith.extui %48 : i1 to i32
    %c0_i32_20 = arith.constant 0 : i32
    %50 = arith.cmpi ne, %49, %c0_i32_20 : i32
    scf.if %50 {
      %c0_21 = arith.constant 0 : index
      %c0_22 = arith.constant 0 : index
      %51 = vector.load %arg3[%c0_21, %c0_22] : memref<1x1xf32, #tpu.memory_space<vmem>>, vector<1x1xf32>
      %cst_23 = arith.constant 8.000000e+00 : f32
      %52 = vector.broadcast %cst_23 : f32 to vector<1x1xf32>
      %53 = arith.divf %51, %52 : vector<1x1xf32>
      %c0_24 = arith.constant 0 : index
      %c0_25 = arith.constant 0 : index
      %54 = vector.load %arg3[%c0_24, %c0_25] : memref<1x1xf32, #tpu.memory_space<vmem>>, vector<1x1xf32>
      tpu.vector_store %arg3[%c0_24, %c0_25], %53 {strides = array<i32>} : memref<1x1xf32, #tpu.memory_space<vmem>>, vector<1x1xf32>,
    } else {
    }
    return
  }
  func.func @transform_0(%arg0: i32) -> (i32, i32) {
    %c0_i32 = arith.constant 0 : i32
    %c0_i32_0 = arith.constant 0 : i32
    return %arg0, %c0_i32 : i32, i32
  }
  func.func @transform_1(%arg0: i32) -> (i32, i32) {
    %c0_i32 = arith.constant 0 : i32
    %c0_i32_0 = arith.constant 0 : i32
    return %arg0, %c0_i32 : i32, i32
  }
  func.func @transform_2(%arg0: i32) -> (i32, i32) {
    %c0_i32 = arith.constant 0 : i32
    %c0_i32_0 = arith.constant 0 : i32
    %c0_i32_1 = arith.constant 0 : i32
    return %c0_i32, %c0_i32_0 : i32, i32
  }
}

</mosaic_0001>

<bundles_post_ra>
// kernel: tpu_custom_call.1
= control target key start
LH: loop header
LB: loop body
LE: loop exit
PB: predicated region body
PF: predicated region fallthrough
CT: control target
= control target key end

     0   :  { %vm20_vm0 = vcmask 130048   ;;  %v129_v2 = vmov 0   ;;  %s172_s0 = inlined_call_operand.vmem [shape: bf16[8,16], index: 0, kind: input, shape index: {}]   ;;  %s173_s1 = inlined_call_operand.vmem [shape: s32[8,1], index: 1, kind: input, shape index: {}]   ;;  %s174_s2 = inlined_call_operand.hbm [shape: f32[1,1], index: 2, kind: output, shape index: {}]  }
   0x1   :  { %v18_v0 = vld [vmem:[%s172_s0] sm:$0xf]  ;;  %100 = vset.pattern.permute.xlu0 %v129_v2 }
   0x2   :  { %v19_v1 = vunpack.c.l.bf16 %v18_v0 }
   0x3   :  { %7 = vsyncpa [#allocation3], 0  ;;  %v34_v4 = vld [vmem:[%s173_s1] sm:$0xff]  ;;  %v32_v8 = vlaneseq  ;;  %vm59_vm2 = vcmask 7168   ;;  %vm16_vm3 = vcmask 0   ;;  %v130_v27 = vmov 0.0  }
   0x4   :  { %v21_v3 = vsel %vm20_vm0, %v19_v1, -inf  ;;  %v43_v15 = vsel %vm20_vm0, %v19_v1, 0.0  ;;  %17 = vst.msk [vmem:[#allocation2] sm:$0x1] %vm16_vm3, %v130_v27  ;;  %s131_s1 = smov [#allocation2]  }
   0x5   :  { %22 = vmax.xlane.f32.xlu0 %v21_v3  ;;  %v33_v9 = vand.u32 127, %v32_v8  ;;  %s87_s13 = sshll.u32 %s131_s1, 4  ;;  %s88_s13 = int_to_ptr.vmem [resolvable:$true] %s87_s13 }
   0x6   :  { %s105_s14 = scalar_lea.vmem %s88_s13, 16  ;;  %s109_s15 = scalar_lea.vmem %s88_s13, 32 }
   0x7   :  { %p106_p0 = scmp.ne.s32.totalorder %s88_s13, %s105_s14  ;;  %p110_p1 = scmp.lt.s32.totalorder %s88_s13, %s88_s13 }
   0x8   :  { %p111_p2 = scmp.lt.s32.totalorder %s109_s15, %s105_s14 }
   0xa   :  { %p112_p3 = por %p111_p2, %p110_p1 }
   0xb   :  { %v58_v35 = vld [vmem:[#allocation2] sm:$0x1] }
   0xc   :  { %p113_p4 = pnand %p112_p3, %p106_p0 }
  0x1b   :  { %36 = vperm.xlu0 %100, %v34_v4  }
  0x92   :  { %v23_v5 = vpop.xlane.xlu0 %22 }
  0x93   :  { %v24_v6 = vsub.f32 %v19_v1, %v23_v5 }
  0x95   :  { %v25_v7 = vmul.f32 1.442695, %v24_v6 }
  0x97   :  { %101 = vpow2.f32 %v25_v7 }
  0x9a   :  { %v37_v10 = vpop.permute.xlu0 %36 }
  0x9b   :  { %vm38_vm1 = vcmp.eq.s32.totalorder %v33_v9, %v37_v10 }
  0x9c   :  { %v39_v12 = vsel %vm38_vm1, %v19_v1, 0.0 }
  0x9d   :  { %v40_v14 = vsel %vm20_vm0, %v39_v12, 0.0 }
  0xa1   :  { %v102_v11 = vpop.eup %101 }
  0xa2   :  { %v27_v13 = vsel %vm20_vm0, %v102_v11, 0.0 }
  0xa3   :  { %28 = vadd.xlane.f32.xlu1 %v27_v13 }
  0xa7   :  { %41 = vadd.xlane.f32.xlu1 %v40_v14 }
  0xab   :  { %44 = vadd.xlane.f32.xlu1 %v43_v15 }
 0x130   :  { %v29_v16 = vpop.xlane.xlu1 %28 }
 0x131   :  { %103 = vlog2.f32 %v29_v16 }
 0x134   :  { %v42_v17 = vpop.xlane.xlu1 %41 }
 0x135   :  { %v47_v22 = vmul.f32 0.9, %v42_v17 }
 0x138   :  { %v45_v19 = vpop.xlane.xlu1 %44 }
 0x139   :  { %v49_v23 = vmul.f32 0.00625, %v45_v19 }
 0x13b   :  { %v104_v18 = vpop.eup %103 }
 0x13c   :  { %v31_v20 = vmul.f32 0.6931472, %v104_v18 }
 0x13e   :  { %v46_v21 = vadd.f32 %v31_v20, %v23_v5 }
 0x140   :  { %v48_v24 = vsub.f32 %v46_v21, %v47_v22 }
 0x142   :  { %v50_v25 = vsub.f32 %v48_v24, %v49_v23 }
 0x144   :  { %v60_v26 = vsel %vm59_vm2, %v50_v25, 0.0 }
 0x145   :  { %61 = vadd.xlane.f32.xlu1 %v60_v26 }
 0x1d2   :  { %v62_v28 = vpop.xlane.xlu1 %61 }
 0x1d3   :  { %v63_v29 = vrot.slane %v62_v28, 4 }
 0x1d5   :  { %v64_v30 = vadd.f32 %v63_v29, %v62_v28 }
 0x1d7   :  { %v65_v31 = vrot.slane %v64_v30, 2 }
 0x1d9   :  { %v66_v32 = vadd.f32 %v65_v31, %v64_v30 }
 0x1db   :  { %v67_v33 = vrot.slane %v66_v32, 1 }
 0x1dd   :  { %v68_v34 = vadd.f32 %v67_v33, %v66_v32 }
 0x1df   :  { %95 = vpush %v68_v34 }
 0x210   :  { %s96_s0 = spop %95 }
 0x211   :  { %v70_v36 = vstv %s96_s0 }
 0x212   :  { %v71_v37 = vadd.f32 %v70_v36, %v58_v35 }
 0x214   :  { %73 = vst.msk [vmem:[#allocation2] sm:$0x1] %vm16_vm3, %v71_v37 }
 0x21b   :  { %v77_v38 = vld [vmem:[#allocation2] sm:$0x1] }
 0x21c   :  { %v79_v39 = vmul.f32 0.125, %v77_v38 }
 0x21e   :  { %80 = vst.msk [vmem:[#allocation2] sm:$0x1] %vm16_vm3, %v79_v39 }
 0x21f   :  { %116 = shalt.err (!%p113_p4)
}
 0x220   :  { %s117_s18 = scalar_lea.hbm %s174_s2, 16 }
 0x221   :  { %p118_p5 = scmp.ne.s32.totalorder %s174_s2, %s117_s18  ;;  %p121_p6 = scmp.lt.u32.totalorder %s117_s18, %s174_s2 }
 0x223   :  { %p123_p7 = pnand %p121_p6, %p118_p5 }
 0x225   :  { %126 = shalt.err (!%p123_p7)
}
 0x226   :  { %90 = dma.vmem_to_hbm [thread:$0]  %s88_s13, 16, %s174_s2, [#allocation3]  }
 0x227   :  { %127 = dma.done.wait [#allocation3], 16  }
 0x228   :  { %128 = vsyncadd [#allocation3], 4294967280 }
 0x229   :  { %94 = vsyncpa [#allocation3], 1 }

</bundles_post_ra>
